<compile_context>
chip_gen: v5e
topology: v5e:2x2
jax: 0.10.0
libtpu: 0.0.40
codegen_flags: <defaults>
</compile_context>

<pallas_src>
import math

import jax
import jax.numpy as jnp
from jax.experimental import pallas as pl
from jax.experimental.pallas import tpu as pltpu

_LANE = 128


def _fusion_kernel(coef_ref, x1_ref, x2_ref, o_ref):
    # coef_ref: scalar-prefetch SMEM (2,) f32 holding [a, b] = [1/(1+w), w/(1+w)].
    a = coef_ref[0]
    b = coef_ref[1]
    res = (x1_ref[...].astype(jnp.float32) * a
           + x2_ref[...].astype(jnp.float32) * b)
    o_ref[...] = res.astype(o_ref.dtype)


def _cdiv(a, b):
    return -(-a // b)


def _round_up(a, m):
    return _cdiv(a, m) * m


def _min_sublane(dtype):
    # Native minimum second-minor tile per dtype width.
    itemsize = jnp.dtype(dtype).itemsize
    return {4: 8, 2: 16, 1: 32}.get(itemsize, 8)


def _device_info():
    """Best-effort TPU generation detection (never fails)."""
    try:
        kind = jax.devices()[0].device_kind.lower()
    except Exception:
        kind = ""
    is_v7x = ("v7" in kind) or ("7x" in kind)
    big_scoped_vmem = is_v7x or ("v6" in kind)   # 32 MiB scoped default
    return is_v7x, big_scoped_vmem


def _pick_block_rows(rows, min_sub, itemsize, cap_bytes):
    """Largest row-block that (a) is a multiple of the dtype's minimum sublane
    tile, (b) keeps one operand tile <= cap_bytes, and (c) leaves >= 2 grid
    steps (when the input is big enough) so the pipeline can overlap."""
    if rows <= min_sub:
        return rows                      # single block equal to full extent
    cap_rows = max(min_sub,
                   (cap_bytes // (_LANE * itemsize)) // min_sub * min_sub)
    target = max(min_sub, _round_up(_cdiv(rows, 2), min_sub))   # >= 2 steps
    block_rows = min(cap_rows, target, _round_up(rows, min_sub))
    return max(min_sub, block_rows)


def _fallback(x1, x2, w):
    ct = jnp.promote_types(x1.dtype, jnp.float32)
    wf = jnp.asarray(w, dtype=ct)
    a = 1.0 / (1.0 + wf)
    b = wf * a
    return (x1.astype(ct) * a + x2.astype(ct) * b).astype(x1.dtype)


def fusion(x1, x2, w):
    """Elementwise fusion: x1 * 1/(1+w) + x2 * w/(1+w)."""
    assert x1.shape == x2.shape and x1.dtype == x2.dtype
    orig_shape = x1.shape
    dtype = x1.dtype
    itemsize = jnp.dtype(dtype).itemsize
    total = math.prod(orig_shape) if orig_shape else 1

    # Plain-JAX fallback for ragged sizes (not lane-aligned), empty inputs,
    # and wide/non-float dtypes (kernel computes in f32).
    if (total == 0 or total % _LANE != 0
            or not jnp.issubdtype(dtype, jnp.floating) or itemsize > 4):
        return _fallback(x1, x2, w)

    is_v7x, big_scoped_vmem = _device_info()
    cap_bytes = (4 << 20) if big_scoped_vmem else (2 << 20)

    # Hoisted coefficients (computed once, delivered via scalar prefetch).
    w32 = jnp.asarray(w, dtype=jnp.float32)
    a = 1.0 / (1.0 + w32)
    b = w32 * a
    coef = jnp.stack([a, b]).astype(jnp.float32)    # shape (2,), lands in SMEM

    min_sub = _min_sublane(dtype)
    rows = total // _LANE
    block_rows = _pick_block_rows(rows, min_sub, itemsize, cap_bytes)
    grid_steps = _cdiv(rows, block_rows)

    # v7x: make the grid length even so both TensorCores stream half the data.
    if is_v7x:
        if grid_steps == 1 and rows > min_sub:
            br = max(min_sub, _round_up(_cdiv(rows, 2), min_sub))
            g = _cdiv(rows, br)
            if g == 2:
                block_rows, grid_steps = br, g
        elif grid_steps > 1 and grid_steps % 2 == 1:
            br = max(min_sub, _round_up(_cdiv(rows, grid_steps + 1), min_sub))
            g = _cdiv(rows, br)
            if g % 2 == 0:
                block_rows, grid_steps = br, g

    core_parallel = getattr(pltpu, "CORE_PARALLEL", "parallel")
    use_core_parallel = is_v7x and grid_steps >= 2 and grid_steps % 2 == 0
    dim_sem = core_parallel if use_core_parallel else "parallel"

    # Explicit scoped-VMEM budget: 3 operands x 2 pipeline buffers x tile + slack.
    tile_bytes = block_rows * _LANE * itemsize
    vmem_limit = int(max(16 << 20, min(6 * tile_bytes + (4 << 20), 48 << 20)))

    x1_2d = x1.reshape(rows, _LANE)
    x2_2d = x2.reshape(rows, _LANE)

    out_2d = pl.pallas_call(
        _fusion_kernel,
        out_shape=jax.ShapeDtypeStruct((rows, _LANE), dtype),
        grid_spec=pltpu.PrefetchScalarGridSpec(
            num_scalar_prefetch=1,
            grid=(grid_steps,),
            in_specs=[
                pl.BlockSpec((block_rows, _LANE), lambda i, coef: (i, 0)),  # x1
                pl.BlockSpec((block_rows, _LANE), lambda i, coef: (i, 0)),  # x2
            ],
            out_specs=pl.BlockSpec((block_rows, _LANE), lambda i, coef: (i, 0)),
        ),
        compiler_params=pltpu.CompilerParams(
            dimension_semantics=(dim_sem,),
            vmem_limit_bytes=vmem_limit),
        cost_estimate=pl.CostEstimate(
            flops=3 * total,
            transcendentals=0,
            bytes_accessed=3 * total * itemsize),
    )(coef, x1_2d, x2_2d)

    return out_2d.reshape(orig_shape)


if __name__ == "__main__":
    key = jax.random.PRNGKey(0)
    k1, k2, k3, k4 = jax.random.split(key, 4)

    # Deterministic parameter init matching nn.Parameter(torch.tensor(0.1)).
    w = jnp.float32(0.1)

    def ref_fn(a1, a2):
        return (a1.astype(jnp.float32) * 1.0 / (1.0 + w)
                + a2.astype(jnp.float32) * w / (w + 1.0))

    # 1) Main NCHW case (float32), multi-step Pallas path.
    B, C, H, W = 2, 4, 16, 16
    x1 = jax.random.normal(k1, (B, C, H, W), dtype=jnp.float32)
    x2 = jax.random.normal(k2, (B, C, H, W), dtype=jnp.float32)
    out = fusion(x1, x2, w)
    jax.block_until_ready(out)
    assert out.shape == (B, C, H, W)
    assert jnp.allclose(out, ref_fn(x1, x2), atol=1e-6, rtol=1e-6)

    # 2) bf16 path (16-row minimum sublane tile).
    x1b = x1.astype(jnp.bfloat16)
    x2b = x2.astype(jnp.bfloat16)
    outb = fusion(x1b, x2b, w)
    jax.block_until_ready(outb)
    assert outb.dtype == jnp.bfloat16
    refb = ref_fn(x1b, x2b).astype(jnp.bfloat16).astype(jnp.float32)
    assert jnp.allclose(outb.astype(jnp.float32), refb, atol=2e-2, rtol=2e-2)

    # 3) Partial-final-block path (rows not a multiple of the block):
    #    verifies Pallas masks the out-of-bounds tail of the last block.
    y1 = jax.random.normal(k3, (2, 4, 45, 16), dtype=jnp.float32)
    y2 = jax.random.normal(k4, (2, 4, 45, 16), dtype=jnp.float32)
    outp = fusion(y1, y2, w)
    jax.block_until_ready(outp)
    assert jnp.allclose(outp, ref_fn(y1, y2), atol=1e-6, rtol=1e-6)

    # 4) Ragged total (not a multiple of 128) -> plain-JAX fallback.
    z1 = jax.random.normal(k1, (2, 3, 5, 7), dtype=jnp.float32)
    z2 = jax.random.normal(k2, (2, 3, 5, 7), dtype=jnp.float32)
    outf = fusion(z1, z2, w)
    jax.block_until_ready(outf)
    assert jnp.allclose(outf, ref_fn(z1, z2), atol=1e-6, rtol=1e-6)

    print("KERNEL_OK")
</pallas_src>

<mosaic_0001>
module attributes {stable_mosaic.version = 11 : i64} {
  func.func @_fusion_kernel(%arg0: i32, %arg1: memref<2xf32, #tpu.memory_space<smem>>, %arg2: memref<8x128xf32, #tpu.memory_space<vmem>>, %arg3: memref<8x128xf32, #tpu.memory_space<vmem>>, %arg4: memref<8x128xf32, #tpu.memory_space<vmem>>) attributes {dimension_semantics = [#tpu.dimension_semantics<parallel>], iteration_bounds = array<i64: 2>, scalar_prefetch = 1 : i64, scratch_operands = 0 : i64, tpu.core_type = #tpu.core_type<tc>, window_params = [{transform_indices = @transform_0, window_bounds = array<i64: 8, 128>}, {transform_indices = @transform_1, window_bounds = array<i64: 8, 128>}, {transform_indices = @transform_2, window_bounds = array<i64: 8, 128>}]} {
    %c0 = arith.constant 0 : index
    %0 = memref.load %arg1[%c0] : memref<2xf32, #tpu.memory_space<smem>>
    %c1 = arith.constant 1 : index
    %1 = memref.load %arg1[%c1] : memref<2xf32, #tpu.memory_space<smem>>
    %c0_0 = arith.constant 0 : index
    %c0_1 = arith.constant 0 : index
    %2 = vector.load %arg2[%c0_0, %c0_1] : memref<8x128xf32, #tpu.memory_space<vmem>>, vector<8x128xf32>
    %3 = vector.broadcast %0 : f32 to vector<8x128xf32>
    %4 = arith.mulf %2, %3 : vector<8x128xf32>
    %c0_2 = arith.constant 0 : index
    %c0_3 = arith.constant 0 : index
    %5 = vector.load %arg3[%c0_2, %c0_3] : memref<8x128xf32, #tpu.memory_space<vmem>>, vector<8x128xf32>
    %6 = vector.broadcast %1 : f32 to vector<8x128xf32>
    %7 = arith.mulf %5, %6 : vector<8x128xf32>
    %8 = arith.addf %4, %7 : vector<8x128xf32>
    %c0_4 = arith.constant 0 : index
    %c0_5 = arith.constant 0 : index
    %9 = vector.load %arg4[%c0_4, %c0_5] : memref<8x128xf32, #tpu.memory_space<vmem>>, vector<8x128xf32>
    tpu.vector_store %arg4[%c0_4, %c0_5], %8 {strides = array<i32>} : memref<8x128xf32, #tpu.memory_space<vmem>>, vector<8x128xf32>,
    return
  }
  func.func @transform_0(%arg0: i32, %arg1: memref<2xf32, #tpu.memory_space<smem>>) -> (i32, i32) {
    %c0_i32 = arith.constant 0 : i32
    %c0_i32_0 = arith.constant 0 : i32
    return %arg0, %c0_i32 : i32, i32
  }
  func.func @transform_1(%arg0: i32, %arg1: memref<2xf32, #tpu.memory_space<smem>>) -> (i32, i32) {
    %c0_i32 = arith.constant 0 : i32
    %c0_i32_0 = arith.constant 0 : i32
    return %arg0, %c0_i32 : i32, i32
  }
  func.func @transform_2(%arg0: i32, %arg1: memref<2xf32, #tpu.memory_space<smem>>) -> (i32, i32) {
    %c0_i32 = arith.constant 0 : i32
    %c0_i32_0 = arith.constant 0 : i32
    return %arg0, %c0_i32 : i32, i32
  }
}

</mosaic_0001>

<bundles_post_ra>
// kernel: tpu_custom_call.1
= control target key start
LH: loop header
LB: loop body
LE: loop exit
PB: predicated region body
PF: predicated region fallthrough
CT: control target
= control target key end

     0   :  { %s542_s15 = smov [#allocation3]   ;;  %s726_s0 = inlined_call_operand.hbm [shape: f32[2], index: 0, kind: input, shape index: {}]   ;;  %s727_s1 = inlined_call_operand.hbm [shape: f32[16,128], index: 1, kind: input, shape index: {}]   ;;  %s728_s2 = inlined_call_operand.hbm [shape: f32[16,128], index: 2, kind: input, shape index: {}]   ;;  %s729_s3 = inlined_call_operand.hbm [shape: f32[16,128], index: 3, kind: output, shape index: {}]  }
   0x1   :  { %s9_s14 = sshll.u32 %s726_s0, 4  ;;  %s10_s14 = int_to_ptr.hbm [resolvable:$true] %s9_s14 }
   0x2   :  { %12 = dma.hbm_to_smem %s10_s14, 16, %s542_s15, [#allocation2] }
   0x3   :  { %512 = dma.done.wait [#allocation2], 16 }
   0x4   :  { %513 = vsyncadd [#allocation2], 4294967280 }
   0x5   :  { %15 = sfence }
   0x6   :  { %16 = vsyncpa [#allocation5], 0 }
   0x7   :  { %18 = vsyncpa [#allocation5 + $0x1], 0 }
   0x8   :  { %19 = vsyncpa [#allocation8], 0 }
   0x9   :  { %21 = vsyncpa [#allocation8 + $0x1], 0 }
   0xa   :  { %22 = vsyncpa [#allocation6], 0 }
   0xb   :  { %24 = vsyncpa [#allocation6 + $0x1], 0  ;;  %s566_s16 = smov 0   ;;  %s568_s17 = smov 0  }
   0xc   :  { %s570_s18 = smov 0   ;;  %s572_s19 = smov 0  }
   0xd LB: > { %s587_s0 = sadd.s32 4294967295, %s540_s19   ;;  %s328_s20 = sadd.s32 4294967294, %s540_s19   ;;  %s540_s19 = sphi %s572_s19, %s740_s19   ;;  %s536_s18 = sphi %s570_s18, %s739_s18   ;;  %s532_s17 = sphi %s568_s17, %s738_s17   ;;  %s528_s16 = sphi %s566_s16, %s737_s16  }
   0xe   : > { %s591_s21 = sadd.s32 1, %s540_s19   ;;  %s37_s22 = sadd.s32 1, %s536_s18 }
   0xf   : > { %s34_s23 = ssub.s32 %s540_s19, %s591_s21  ;;  %p44_p0 = scmp.ne.s32.totalorder %s536_s18, %s532_s17 }
  0x10   : > { %p35_p1 = scmp.eq.s32.totalorder %s34_s23, 0  ;;  %p45_p2 = scmp.eq.s32.totalorder %s540_s19, 0 }
  0x11   : > { %p50_p3 = scmp.ne.s32.totalorder %s532_s17, %s528_s16  ;;  %p51_p4 = scmp.eq.s32.totalorder %s587_s0, 0 }
  0x12   : > { %s603_s24 = scalar_select %p35_p1, %s536_s18, %s37_s22  }
  0x13   : > { %p605_p5 = por %p45_p2, %p44_p0  ;;  %p609_p6 = por %p51_p4, %p50_p3 }
  0x14   : > { %p100_p7 = scmp.eq.s32.totalorder %s587_s0, 1  ;;  %p106_p8 = scmp.eq.s32.totalorder %s328_s20, 1 }
  0x15   : > { %p361_p10 = scmp.lt.s32.totalorder %s540_s19, 2  ;;  %s625_s29 = sand.u32 1, %s536_s18  }
  0x16   : > { %p616_p11 = por %p100_p7, %p44_p0  ;;  %p620_p12 = por %p106_p8, %p50_p3 }
  0x17   : > { %s332_s30 = sshll.u32 %s540_s19, 3  ;;  %s331_s4 = sshll.u32 %s625_s29, 3 }
  0x18   : > { %s134_s7 = scalar_lea.hbm %s727_s1, %s332_s30  ;;  %s130_s9 = scalar_lea.vmem [#allocation4], %s331_s4 }
  0x19   : > { %s136_s8 = sshll.u32 %s134_s7, 4  ;;  %s138_s10 = sshll.u32 %s130_s9, 4  ;;  %s137_s8 = int_to_ptr.hbm [resolvable:$true] %s136_s8  ;;  %s139_s10 = int_to_ptr.vmem [resolvable:$true] %s138_s10 }
  0x1a   : > { %p634_p13 = pnand %p361_p10, %p605_p5  ;;  %p335_p0 = scmp.ge.s32.totalorder %s540_s19, 1 }
  0x1b   : > { %p162_p1 = scmp.lt.s32.totalorder %s540_s19, 3  ;;  %s127_s12 = scalar_lea.sflag [#allocation5], %s625_s29 }
  0x1c   : > { %s408_s13 = sshra.s32 %s137_s8, 4  ;;  %p412_p3 = pneg %p634_p13  ;;  %s409_s13 = int_to_ptr.hbm [resolvable:$true] %s408_s13 }
  0x1d   : > { %s410_s14 = scalar_lea.hbm %s409_s13, 8  ;;  %s415_s22 = scalar_lea.hbm %s727_s1, 16 }
  0x1e   : > { %p411_p2 = scmp.ne.s32.totalorder %s409_s13, %s410_s14  ;;  %p416_p5 = scmp.lt.s32.totalorder %s409_s13, %s727_s1 }
  0x1f   : > { %p417_p8 = scmp.lt.s32.totalorder %s415_s22, %s410_s14 }
  0x20   : > { %p413_p4 = pnand %p412_p3, %p411_p2 }
  0x21   : > { %p418_p10 = por %p417_p8, %p416_p5 }
  0x22   : > { %p414_p7 = pneg %p413_p4 }
  0x24   : > { %p419_p9 = pnand %p418_p10, %p414_p7 }
  0x26   : > { %422 = shalt.err (!%p419_p9)
}
  0x27   : > { %353 = dma.hbm_to_vmem [thread:$0]  (!%p634_p13), %s137_s8, 128, %s139_s10, %s127_s12  }
  0x28   : > { %p658_p2 = pnand %p335_p0, %p162_p1  ;;  %s153_s9 = scalar_lea.hbm %s728_s2, %s332_s30 }
  0x29   : > { %s155_s13 = sshll.u32 %s153_s9, 4  ;;  %s149_s14 = scalar_lea.vmem [#allocation7], %s331_s4  ;;  %s156_s13 = int_to_ptr.hbm [resolvable:$true] %s155_s13 }
  0x2a   : > { %s157_s15 = sshll.u32 %s149_s14, 4  ;;  %s146_s20 = scalar_lea.sflag [#allocation8], %s625_s29  ;;  %s158_s15 = int_to_ptr.vmem [resolvable:$true] %s157_s15 }
  0x2b   : > { %s438_s22 = sshra.s32 %s156_s13, 4  ;;  %s445_s12 = scalar_lea.hbm %s728_s2, 16  ;;  %s439_s22 = int_to_ptr.hbm [resolvable:$true] %s438_s22 }
  0x2c   : > { %s440_s23 = scalar_lea.hbm %s439_s22, 8  ;;  %p446_p4 = scmp.lt.s32.totalorder %s439_s22, %s728_s2 }
  0x2d   : > { %p441_p9 = scmp.ne.s32.totalorder %s439_s22, %s440_s23  ;;  %p447_p7 = scmp.lt.s32.totalorder %s445_s12, %s440_s23 }
  0x2f   : > { %p443_p0 = pnand %p441_p9, %p412_p3  ;;  %p448_p5 = por %p447_p7, %p446_p4 }
  0x31   : > { %p444_p1 = pneg %p443_p0 }
  0x33   : > { %p449_p8 = pnand %p448_p5, %p444_p1 }
  0x35   : > { %452 = shalt.err (!%p449_p8)
}
  0x36   : > { %356 = dma.hbm_to_vmem [thread:$0]  (!%p634_p13), %s156_s13, 128, %s158_s15, %s146_s20  }
  0x37   : > { %166 = sbr.rel (%p658_p2) target bundleno = 79 (0x4f), region = 28  ;;  %s680_s29 = sand.u32 (!%p658_p2), 1, %s532_s17  }
  0x38   : > { %s336_s4 = sshll.u32 (!%p658_p2), %s680_s29, 3  ;;  %s169_s6 = scalar_lea.sflag (!%p658_p2), [#allocation5], %s680_s29 }
  0x39   : > { %s172_s7 = scalar_lea.vmem (!%p658_p2), [#allocation4], %s336_s4 }
  0x3c   : > { %515 = dma.done.wait (%p609_p6), %s169_s6, 128  }
  0x3d   : > { %517 = vsyncadd (%p609_p6), %s169_s6, 4294967168  ;;  %s179_s11 = scalar_lea.sflag [#allocation8], %s680_s29  ;;  %s182_s9 = scalar_lea.vmem [#allocation7], %s336_s4 }
  0x3e   : > { %519 = dma.done.wait (%p609_p6), %s179_s11, 128  }
  0x3f   : > { %521 = vsyncadd (%p609_p6), %s179_s11, 4294967168  ;;  %s209_s5 = sld [smem:[#allocation3]]  ;;  %s341_s14 = sshll.u32 %s587_s0, 3  ;;  %v211_v0 = vld [vmem:[%s172_s7] sm:$0xff]  ;;  %v214_v2 = vld [vmem:[%s182_s9] sm:$0xff] }
  0x40   : > { %s339_s13 = sld [smem:[#allocation3 + $0x1]]  ;;  %s230_s22 = scalar_lea.hbm %s729_s3, %s341_s14 }
  0x41   : > { %s208_s23 = scalar_lea.vmem [#allocation9], %s336_s4  ;;  %s234_s10 = sshll.u32 %s230_s22, 4  ;;  %s235_s10 = int_to_ptr.hbm [resolvable:$true] %s234_s10 }
  0x42   : > { %s232_s8 = sshll.u32 %s208_s23, 4  ;;  %s220_s26 = scalar_lea.sflag [#allocation6], %s680_s29  ;;  %s233_s8 = int_to_ptr.vmem [resolvable:$true] %s232_s8 }
  0x43   : > { %s482_s0 = sshra.s32 %s235_s10, 4  ;;  %s488_s6 = scalar_lea.hbm %s729_s3, 16  ;;  %s483_s0 = int_to_ptr.hbm [resolvable:$true] %s482_s0 }
  0x44   : > { %s484_s12 = scalar_lea.hbm %s483_s0, 8  ;;  %p489_p10 = scmp.lt.s32.totalorder %s483_s0, %s729_s3 }
  0x45   : > { %v212_v1 = vstv %s209_s5  ;;  %p485_p6 = scmp.ne.s32.totalorder %s483_s0, %s484_s12  ;;  %p490_p2 = scmp.lt.s32.totalorder %s488_s6, %s484_s12 }
  0x46   : > { %v213_v3 = vmul.f32 %v212_v1, %v211_v0  ;;  %v215_v4 = vstv %s339_s13 }
  0x47   : > { %v216_v5 = vmul.f32 %v215_v4, %v214_v2  ;;  %p486_p13 = pnand %p485_p6, %p616_p11  ;;  %p491_p9 = por %p490_p2, %p489_p10 }
  0x49   : > { %v217_v6 = vadd.f32 %v216_v5, %v213_v3  ;;  %p487_p3 = pneg %p486_p13 }
  0x4b   : > { %218 = vst [vmem:[%s208_s23] sm:$0xff] %v217_v6  ;;  %p492_p0 = pnand %p491_p9, %p487_p3 }
  0x4d   : > { %495 = shalt.err (!%p492_p0)
}
  0x4e   : > { %348 = dma.vmem_to_hbm [thread:$0]  (%p616_p11), %s233_s8, 128, %s235_s10, %s220_s26  }
  0x4f PF: > { %s246_s29 = sand.u32 1, %s528_s16   ;;  %p736_p1 = scmp.ge.s32.totalorder %s540_s19, 2 }
  0x50   : > { %s247_s11 = scalar_lea.sflag [#allocation6], %s246_s29 }
  0x51   : > { %p358_p4 = pnand %p736_p1, %p620_p12 }
  0x53   : > { %p359_p7 = pneg %p358_p4 }
  0x55   : > { %523 = dma.done.wait (%p359_p7), %s247_s11, 128  }
  0x56   : > { %525 = vsyncadd (%p359_p7), %s247_s11, 4294967168  ;;  %p27_p5 = scmp.ge.s32.totalorder %s591_s21, 4   ;;  %s737_s16 = smov %s532_s17 }
  0x57   : > { %s738_s17 = smov %s536_s18  ;;  %s739_s18 = smov %s603_s24 }
  0x58   : > { %s740_s19 = smov %s591_s21  ;;  %29 = sbr.rel (!%p27_p5) target bundleno = 13 (0xd), region = 86 }
  0x5d   :  { %253 = vsyncpa [#allocation5], 1 }
  0x5e   :  { %255 = vsyncpa [#allocation5 + $0x1], 1 }
  0x5f   :  { %256 = vsyncpa [#allocation8], 1 }
  0x60   :  { %258 = vsyncpa [#allocation8 + $0x1], 1 }
  0x61   :  { %259 = vsyncpa [#allocation6], 1 }
  0x62   :  { %261 = vsyncpa [#allocation6 + $0x1], 1 }

</bundles_post_ra>
